<compile_context>
chip_gen: v7x
topology: tpu7x:2x2x1
jax: 0.10.0
libtpu: 0.0.40
codegen_flags: <defaults>
</compile_context>

<pallas_src>
import functools

import jax
import jax.numpy as jnp
from jax.experimental import pallas as pl
from jax.experimental.pallas import tpu as pltpu

EPS = 1e-5
_TILE_BYTES_CAP = 2 << 20       # ~2 MiB of input per grid step
_MIN_GRID_STEPS = 8             # >= 4 steps per TensorCore on v7x
_MIN_ROWS_PER_STEP = 128        # don't shrink tiles below ~128 rows of work
_VMEM_LIMIT_BYTES = 32 << 20    # ample for 2 MiB tiles; safe on v5e/v6e/v7x


def _layernorm_kernel(x_ref, wb_ref, o_ref, *, apply_in_input_dtype):
    # x_ref: (TILE_R, D); wb_ref: (2, D) [row 0 = weight, row 1 = bias]; o_ref like x_ref.
    x = x_ref[...]
    inv_d = 1.0 / x.shape[-1]
    w = wb_ref[0:1, :]
    b = wb_ref[1:2, :]
    if apply_in_input_dtype:
        # v6e/v7x bf16 path: f32 accumulation for the statistics, packed-bf16
        # VPU ops for the elementwise center/scale/affine phase.
        mean = jnp.sum(x.astype(jnp.float32), axis=-1, keepdims=True) * inv_d
        xc = x - mean.astype(x.dtype)
        var = jnp.sum((xc * xc).astype(jnp.float32), axis=-1, keepdims=True) * inv_d
        inv = jax.lax.rsqrt(var + EPS).astype(x.dtype)
        o_ref[...] = xc * inv * w + b
    else:
        # f32 path (f32 inputs, or bf16 on chips without a packed-bf16 VPU).
        xf = x.astype(jnp.float32)
        mean = jnp.sum(xf, axis=-1, keepdims=True) * inv_d
        xc = xf - mean
        var = jnp.sum(xc * xc, axis=-1, keepdims=True) * inv_d
        inv = jax.lax.rsqrt(var + EPS)
        o_ref[...] = (xc * inv * w + b).astype(o_ref.dtype)


def _round_up(n, m):
    return ((n + m - 1) // m) * m


def _pick_tile_rows(R, D, itemsize, row_multiple):
    rows_rounded = _round_up(R, row_multiple)
    bytes_per_row = max(D * itemsize, 1)
    # Cap the input tile at ~2 MiB: the pipelined-streaming bandwidth plateau is
    # reached well before this, and double-buffered in+out plus the kernel's f32
    # temporaries stay comfortably under v7x's 64 MiB VMEM.
    cap_rows = (_TILE_BYTES_CAP // bytes_per_row) // row_multiple * row_multiple
    cap_rows = max(cap_rows, row_multiple)
    tile = min(cap_rows, rows_rounded)
    # Guarantee >= _MIN_GRID_STEPS grid steps when there is enough work so each
    # v7x TensorCore gets >= 4 tiles (sharding + double-buffer overlap within a
    # core); near-neutral on single-core v5e/v6e.
    if rows_rounded >= _MIN_GRID_STEPS * _MIN_ROWS_PER_STEP:
        tile = min(tile, _round_up(pl.cdiv(rows_rounded, _MIN_GRID_STEPS), row_multiple))
    return max(tile, row_multiple)


def _use_native_dtype_apply(dtype):
    """bf16 apply phase only on chips with a packed-bf16 VPU (v6e / v7x)."""
    if jnp.dtype(dtype) != jnp.dtype(jnp.bfloat16):
        return False
    try:
        kind = jax.devices()[0].device_kind.lower()
    except Exception:
        return False
    return any(tag in kind for tag in ("v6", "v7"))


def layer_norm(x, weight, bias, *, tile_rows=None):
    """Equivalent of F.layer_norm(x, (D,), weight, bias, eps=1e-5), D = x.shape[-1].

    Fast path expects D to be a multiple of 128 (lane-dense loads/stores);
    smaller D is correct but lane-underfilled.
    """
    orig_shape = x.shape
    D = orig_shape[-1]
    x2 = x.reshape(-1, D)
    R = x2.shape[0]

    itemsize = jnp.dtype(x.dtype).itemsize
    # Sublane packing: f32 -> 8 rows, bf16 -> 16, int8/fp8 -> 32.
    row_multiple = max(8, 32 // max(itemsize, 1))

    if tile_rows is None:
        tile_rows = _pick_tile_rows(R, D, itemsize, row_multiple)
    else:
        tile_rows = max(row_multiple, _round_up(tile_rows, row_multiple))

    native_apply = _use_native_dtype_apply(x.dtype)
    param_dtype = x.dtype if native_apply else jnp.float32
    # Single (2, D) resident block: row 0 = weight, row 1 = bias. Constant
    # index_map -> the block index never changes, so it is DMA'd once and stays
    # in VMEM for the whole grid.
    wb = jnp.stack([weight.astype(param_dtype), bias.astype(param_dtype)], axis=0)

    # Ragged last block instead of host-side padding: Pallas masks the partial
    # output writes; out-of-bounds rows may compute garbage but never affect
    # in-bounds rows (rows are independent).
    grid = (pl.cdiv(R, tile_rows),)

    kernel = functools.partial(_layernorm_kernel, apply_in_input_dtype=native_apply)

    out = pl.pallas_call(
        kernel,
        out_shape=jax.ShapeDtypeStruct((R, D), x.dtype),
        grid_spec=pltpu.PrefetchScalarGridSpec(
            num_scalar_prefetch=0,
            grid=grid,
            in_specs=[
                pl.BlockSpec((tile_rows, D), lambda i: (i, 0)),
                pl.BlockSpec((2, D), lambda i: (0, 0)),
            ],
            out_specs=pl.BlockSpec((tile_rows, D), lambda i: (i, 0)),
        ),
        compiler_params=pltpu.CompilerParams(
            dimension_semantics=("parallel",),
            vmem_limit_bytes=_VMEM_LIMIT_BYTES,
        ),
    )(x2, wb)

    return out.reshape(orig_shape)


def _ref_layer_norm(x, weight, bias):
    mean = jnp.mean(x, axis=-1, keepdims=True)
    var = jnp.mean((x - mean) ** 2, axis=-1, keepdims=True)
    return (x - mean) / jnp.sqrt(var + EPS) * weight + bias


if __name__ == "__main__":
    # Shapes implied by typical transformer usage: (batch, seq, hidden)
    B, S, H = 2, 8, 32
    key = jax.random.PRNGKey(0)
    x = jax.random.normal(key, (B, S, H), dtype=jnp.float32)

    # Fresh module parameters: torch.ones(ndim) / torch.zeros(ndim)
    weight = jnp.ones((H,), dtype=jnp.float32)
    bias = jnp.zeros((H,), dtype=jnp.float32)

    y = layer_norm(x, weight, bias)
    jax.block_until_ready(y)
    ref = _ref_layer_norm(x, weight, bias)
    assert jnp.allclose(y, ref, atol=2e-5, rtol=2e-5), "mismatch vs reference"

    # Ragged-rows path (R = 15, not a multiple of the tile) with a non-trivial
    # affine transform; no host-side pad/slice is emitted.
    k1, k2, k3 = jax.random.split(jax.random.PRNGKey(1), 3)
    x_odd = jax.random.normal(k1, (3, 5, H), dtype=jnp.float32)
    w_odd = 1.0 + 0.1 * jax.random.normal(k2, (H,), dtype=jnp.float32)
    b_odd = 0.1 * jax.random.normal(k3, (H,), dtype=jnp.float32)
    y_odd = layer_norm(x_odd, w_odd, b_odd)
    jax.block_until_ready(y_odd)
    ref_odd = _ref_layer_norm(x_odd, w_odd, b_odd)
    assert jnp.allclose(y_odd, ref_odd, atol=2e-5, rtol=2e-5), "mismatch (ragged path)"

    print("KERNEL_OK")
</pallas_src>

<mosaic_0001>
module attributes {stable_mosaic.version = 11 : i64} {
  func.func @_layernorm_kernel(%arg0: i32, %arg1: memref<16x32xf32, #tpu.memory_space<vmem>>, %arg2: memref<2x32xf32, #tpu.memory_space<vmem>>, %arg3: memref<16x32xf32, #tpu.memory_space<vmem>>) attributes {dimension_semantics = [#tpu.dimension_semantics<parallel>], iteration_bounds = array<i64: 1>, scalar_prefetch = 0 : i64, scratch_operands = 0 : i64, tpu.core_type = #tpu.core_type<tc>, window_params = [{transform_indices = @transform_0, window_bounds = array<i64: 16, 32>}, {pipeline_mode = #tpu.pipeline_mode<synchronous>, transform_indices = @transform_1, window_bounds = array<i64: 2, 32>}, {transform_indices = @transform_2, window_bounds = array<i64: 16, 32>}]} {
    %c0 = arith.constant 0 : index
    %c0_0 = arith.constant 0 : index
    %0 = vector.load %arg1[%c0, %c0_0] : memref<16x32xf32, #tpu.memory_space<vmem>>, vector<16x32xf32>
    %c0_1 = arith.constant 0 : index
    %c0_2 = arith.constant 0 : index
    %1 = vector.load %arg2[%c0_1, %c0_2] : memref<2x32xf32, #tpu.memory_space<vmem>>, vector<1x32xf32>
    %c1 = arith.constant 1 : index
    %c0_3 = arith.constant 0 : index
    %2 = vector.load %arg2[%c1, %c0_3] : memref<2x32xf32, #tpu.memory_space<vmem>>, vector<1x32xf32>
    %cst = arith.constant dense<0.000000e+00> : vector<16xf32>
    %3 = vector.multi_reduction <add>, %0, %cst [1] : vector<16x32xf32> to vector<16xf32>
    %4 = vector.shape_cast %3 : vector<16xf32> to vector<16x1xf32>
    %cst_4 = arith.constant 3.125000e-02 : f32
    %5 = vector.broadcast %cst_4 : f32 to vector<16x1xf32>
    %6 = arith.mulf %4, %5 : vector<16x1xf32>
    %7 = vector.broadcast %6 : vector<16x1xf32> to vector<16x32xf32>
    %8 = arith.subf %0, %7 : vector<16x32xf32>
    %9 = arith.mulf %8, %8 : vector<16x32xf32>
    %cst_5 = arith.constant dense<0.000000e+00> : vector<16xf32>
    %10 = vector.multi_reduction <add>, %9, %cst_5 [1] : vector<16x32xf32> to vector<16xf32>
    %11 = vector.shape_cast %10 : vector<16xf32> to vector<16x1xf32>
    %cst_6 = arith.constant 3.125000e-02 : f32
    %12 = vector.broadcast %cst_6 : f32 to vector<16x1xf32>
    %13 = arith.mulf %11, %12 : vector<16x1xf32>
    %cst_7 = arith.constant 9.99999974E-6 : f32
    %14 = vector.broadcast %cst_7 : f32 to vector<16x1xf32>
    %15 = arith.addf %13, %14 : vector<16x1xf32>
    %16 = math.rsqrt %15 : vector<16x1xf32>
    %17 = vector.broadcast %16 : vector<16x1xf32> to vector<16x32xf32>
    %18 = arith.mulf %8, %17 : vector<16x32xf32>
    %19 = vector.broadcast %1 : vector<1x32xf32> to vector<16x32xf32>
    %20 = arith.mulf %18, %19 : vector<16x32xf32>
    %21 = vector.broadcast %2 : vector<1x32xf32> to vector<16x32xf32>
    %22 = arith.addf %20, %21 : vector<16x32xf32>
    %c0_8 = arith.constant 0 : index
    %c0_9 = arith.constant 0 : index
    %23 = vector.load %arg3[%c0_8, %c0_9] : memref<16x32xf32, #tpu.memory_space<vmem>>, vector<16x32xf32>
    tpu.vector_store %arg3[%c0_8, %c0_9], %22 {strides = array<i32>} : memref<16x32xf32, #tpu.memory_space<vmem>>, vector<16x32xf32>,
    return
  }
  func.func @transform_0(%arg0: i32) -> (i32, i32) {
    %c0_i32 = arith.constant 0 : i32
    %c0_i32_0 = arith.constant 0 : i32
    return %arg0, %c0_i32 : i32, i32
  }
  func.func @transform_1(%arg0: i32) -> (i32, i32) {
    %c0_i32 = arith.constant 0 : i32
    %c0_i32_0 = arith.constant 0 : i32
    %c0_i32_1 = arith.constant 0 : i32
    return %c0_i32, %c0_i32_0 : i32, i32
  }
  func.func @transform_2(%arg0: i32) -> (i32, i32) {
    %c0_i32 = arith.constant 0 : i32
    %c0_i32_0 = arith.constant 0 : i32
    return %arg0, %c0_i32 : i32, i32
  }
}

</mosaic_0001>

<bundles_post_ra>
// kernel: tpu_custom_call.1
= control target key start
LH: loop header
LB: loop body
LE: loop exit
PB: predicated region body
PF: predicated region fallthrough
CT: control target
= control target key end

     0   :  { %7 = vsyncpa [#allocation3], 0  ;;  %s207_s0 = inlined_call_operand.hbm [shape: f32[16,32], index: 0, kind: input, shape index: {}]   ;;  %s208_s1 = inlined_call_operand.vmem [shape: f32[2,32], index: 1, kind: input, shape index: {}]   ;;  %s209_s2 = inlined_call_operand.hbm [shape: f32[16,32], index: 2, kind: output, shape index: {}]  }
   0x1   :  { %8 = vsyncpa [#allocation4], 0  ;;  %s146_s9 = smov [#allocation2]   ;;  %s98_s13 = scalar_lea.hbm %s207_s0, 256 }
   0x2   :  { %s14_s10 = sshll.u32 %s146_s9, 4  ;;  %p99_p0 = scmp.ne.s32.totalorder %s207_s0, %s98_s13  ;;  %s15_s10 = int_to_ptr.vmem [resolvable:$true] %s14_s10 }
   0x3   :  { %p102_p1 = scmp.lt.u32.totalorder %s98_s13, %s207_s0 }
   0x5   :  { %p104_p2 = pnand %p102_p1, %p99_p0 }
   0x7   :  { %107 = shalt.err (!%p104_p2)
}
   0x8   :  { %s108_s18 = scalar_lea.vmem %s15_s10, 256  ;;  %p113_p4 = scmp.lt.s32.totalorder %s15_s10, %s15_s10 }
   0x9   :  { %p109_p3 = scmp.ne.s32.totalorder %s15_s10, %s108_s18  ;;  %p114_p5 = scmp.lt.s32.totalorder %s108_s18, %s108_s18 }
   0xb   :  { %p115_p6 = por %p114_p5, %p113_p4 }
   0xd   :  { %p116_p7 = pnand %p115_p6, %p109_p3 }
   0xf   :  { %119 = shalt.err (!%p116_p7)
}
  0x10   :  { %s147_s19 = smov 128   ;;  %s148_s20 = smov 8  }
  0x11   :  { %20 = dma.hbm_to_vmem [thread:$0]  %s207_s0, 256, %s15_s10, [#allocation3], %s147_s19, %s147_s19, %s148_s20  }
  0x12   :  { %142 = dma.done.wait [#allocation3], 256  }
  0x13   :  { %143 = vsyncadd [#allocation3], 4294967040  ;;  %vm30_vm0 = vcmask 261120   ;;  %v26_v0 = vld [vmem:[#allocation2] sm:$0xff]  ;;  %v27_v1 = vld [vmem:[#allocation2 + $0x8] sm:$0xff]  ;;  %s149_s26 = smov [#allocation5]  }
  0x14   :  { %v31_v2 = vsel %vm30_vm0, %v26_v0, 0.0  ;;  %v34_v3 = vsel %vm30_vm0, %v27_v1, 0.0  ;;  %v88_v21 = vld [vmem:[%s208_s1] ss:$0 sm:$0xff]  ;;  %v89_v23 = vld [vmem:[%s208_s1 + $0x1] ss:$0 sm:$0xff] }
  0x15   :  { %32 = vadd.xlane.f32.xlu0 %v31_v2  ;;  %s76_s27 = sshll.u32 %s149_s26, 4  ;;  %s77_s27 = int_to_ptr.vmem [resolvable:$true] %s76_s27 }
  0x16   :  { %s120_s28 = scalar_lea.vmem %s77_s27, 256  ;;  %p125_p9 = scmp.lt.s32.totalorder %s77_s27, %s77_s27 }
  0x17   :  { %p121_p8 = scmp.ne.s32.totalorder %s77_s27, %s120_s28  ;;  %p126_p10 = scmp.lt.s32.totalorder %s120_s28, %s120_s28 }
  0x19   :  { %35 = vadd.xlane.f32.xlu0 %v34_v3  ;;  %p127_p11 = por %p126_p10, %p125_p9 }
  0x1b   :  { %p128_p12 = pnand %p127_p11, %p121_p8 }
  0xa2   :  { %v33_v4 = vpop.xlane.xlu0 %32 }
  0xa3   :  { %v37_v5 = vmul.f32 0.03125, %v33_v4 }
  0xa5   :  { %v39_v6 = vsub.f32 %v26_v0, %v37_v5 }
  0xa6   :  { %v36_v7 = vpop.xlane.xlu0 %35 }
  0xa7   :  { %v38_v8 = vmul.f32 0.03125, %v36_v7  ;;  %v41_v9 = vmul.f32 %v39_v6, %v39_v6 }
  0xa9   :  { %v40_v10 = vsub.f32 %v27_v1, %v38_v8  ;;  %v43_v11 = vsel %vm30_vm0, %v41_v9, 0.0 }
  0xaa   :  { %44 = vadd.xlane.f32.xlu1 %v43_v11 }
  0xab   :  { %v42_v12 = vmul.f32 %v40_v10, %v40_v10 }
  0xad   :  { %v46_v13 = vsel %vm30_vm0, %v42_v12, 0.0 }
  0xae   :  { %47 = vadd.xlane.f32.xlu1 %v46_v13 }
 0x137   :  { %v45_v14 = vpop.xlane.xlu1 %44 }
 0x138   :  { %v49_v15 = vmul.f32 0.03125, %v45_v14 }
 0x13a   :  { %v51_v16 = vadd.f32 1e-05, %v49_v15 }
 0x13b   :  { %v48_v17 = vpop.xlane.xlu1 %47 }
 0x13c   :  { %94 = vrsqrt.f32 %v51_v16  ;;  %v50_v18 = vmul.f32 0.03125, %v48_v17 }
 0x13e   :  { %v52_v19 = vadd.f32 1e-05, %v50_v18 }
 0x140   :  { %96 = vrsqrt.f32 %v52_v19 }
 0x146   :  { %v95_v20 = vpop.eup %94 }
 0x147   :  { %v55_v22 = vmul.f32 %v95_v20, %v39_v6 }
 0x149   :  { %v61_v24 = vmul.f32 %v88_v21, %v55_v22 }
 0x14a   :  { %v97_v25 = vpop.eup %96 }
 0x14b   :  { %v56_v26 = vmul.f32 %v97_v25, %v40_v10  ;;  %v67_v27 = vadd.f32 %v89_v23, %v61_v24 }
 0x14d   :  { %v62_v28 = vmul.f32 %v88_v21, %v56_v26  ;;  %69 = vst.msk [vmem:[#allocation5] sm:$0xff] %vm30_vm0, %v67_v27 }
 0x14f   :  { %v68_v29 = vadd.f32 %v89_v23, %v62_v28 }
 0x151   :  { %70 = vst.msk [vmem:[#allocation5 + $0x8] sm:$0xff] %vm30_vm0, %v68_v29 }
 0x152   :  { %131 = shalt.err (!%p128_p12)
}
 0x153   :  { %s132_s30 = scalar_lea.hbm %s209_s2, 256 }
 0x154   :  { %p133_p13 = scmp.ne.s32.totalorder %s209_s2, %s132_s30  ;;  %p136_p0 = scmp.lt.u32.totalorder %s132_s30, %s209_s2 }
 0x156   :  { %p138_p1 = pnand %p136_p0, %p133_p13 }
 0x158   :  { %141 = shalt.err (!%p138_p1)
}
 0x159   :  { %82 = dma.vmem_to_hbm [thread:$0]  %s77_s27, 256, %s209_s2, [#allocation4], %s147_s19, %s147_s19, %s148_s20  }
 0x15a   :  { %144 = dma.done.wait [#allocation4], 256  }
 0x15b   :  { %145 = vsyncadd [#allocation4], 4294967040 }
 0x15c   :  { %86 = vsyncpa [#allocation3], 1 }
 0x15d   :  { %87 = vsyncpa [#allocation4], 1 }

</bundles_post_ra>
